<compile_context>
chip_gen: v5e
topology: v5e:2x2
jax: 0.10.0
libtpu: 0.0.40
codegen_flags: <defaults>
</compile_context>

<pallas_src>
import jax
import jax.numpy as jnp
from jax.experimental import pallas as pl
from jax.experimental.pallas import tpu as pltpu

_LANE = 128
_SUBLANE = 8


def _round_up(x, m):
    return ((x + m - 1) // m) * m


def _cdiv(a, b):
    return (a + b - 1) // b


def _policy_kernel(x_ref, w1_ref, b1_ref, w2_ref, b2_ref, mean_ref):
    # Hidden layer: (tb, obs_dim) @ (obs_dim, hidden) on the MXU, bias+ReLU on VPU.
    h = jnp.dot(x_ref[...], w1_ref[...], preferred_element_type=jnp.float32)
    h = jnp.maximum(h + b1_ref[...], 0.0)
    # Output layer: (tb, hidden) @ (hidden, act_dim) -> unpadded (tb, act_dim) store.
    m = jnp.dot(h, w2_ref[...], preferred_element_type=jnp.float32)
    mean_ref[...] = (m + b2_ref[...]).astype(mean_ref.dtype)


def continuous_policy_forward(x, params, *, block_b=4096):
    """x: (B, obs_dim) float32. Returns (mean (B, act_dim), std (act_dim,))."""
    w1, b1, w2, b2, log_std = (params["w1"], params["b1"], params["w2"],
                               params["b2"], params["log_std"])
    B, obs_dim = x.shape
    hidden = w1.shape[1]
    act_dim = w2.shape[1]
    itemsize = 4  # f32

    # --- generation-aware scoped-VMEM clamp -------------------------------------
    try:
        vmem_cap = int(pltpu.get_tpu_info().vmem_capacity_bytes)
    except Exception:  # pragma: no cover - conservative fallback
        vmem_cap = 64 << 20  # assume v7x (smallest physical VMEM)
    # v7x (64 MiB physical) -> clamp 32 MiB; v5e/v6e (128 MiB) -> allow 64 MiB.
    vmem_clamp = (32 << 20) if vmem_cap <= (64 << 20) else (64 << 20)

    # --- VMEM accounting ---------------------------------------------------------
    # Weight/bias blocks get buffer_count (=2) buffers even with constant
    # index_maps, so count them double-buffered.
    weight_bytes = (obs_dim * hidden + hidden + hidden * act_dim + act_dim) * itemsize
    resident_weight_bytes = 2 * weight_bytes
    if resident_weight_bytes + (4 << 20) > vmem_clamp:
        # TODO(synk): add a K/N-tiled path for layers whose weights exceed VMEM.
        raise ValueError("Layer weights too large for VMEM-resident policy kernel.")

    # Per batch-row: double-buffered x + mean tiles plus the hidden intermediate.
    per_row_bytes = (2 * (obs_dim + act_dim) + hidden) * itemsize
    tile_budget = max(vmem_clamp - resident_weight_bytes - (4 << 20), 1 << 20)
    max_rows = max(_SUBLANE, (tile_budget // per_row_bytes) // _SUBLANE * _SUBLANE)

    # --- batch tile: balance step count vs padding waste; >=2 steps when the ------
    # --- batch is big enough so both v7x TensorCores get work ---------------------
    num_steps = max(1, _cdiv(B, block_b))
    if B > _SUBLANE:
        num_steps = max(num_steps, 2)
    tb = _round_up(_cdiv(max(B, 1), num_steps), _SUBLANE)
    tb = min(tb, max_rows)

    b_pad = _round_up(max(B, 1), tb)
    if b_pad != B:
        x = jnp.pad(x, ((0, b_pad - B), (0, 0)))
    grid = (b_pad // tb,)

    # --- VMEM limit with headroom --------------------------------------------------
    tile_io_bytes = 2 * tb * (obs_dim + act_dim) * itemsize  # double-buffered x + mean
    scratch_bytes = tb * hidden * itemsize                    # hidden intermediate
    vmem_limit = int(1.5 * (tile_io_bytes + resident_weight_bytes + scratch_bytes)) + (4 << 20)
    vmem_limit = int(min(max(vmem_limit, 8 << 20), vmem_clamp))

    flops = 2 * b_pad * (obs_dim * hidden + hidden * act_dim)
    # Constant-index blocks are fetched once; count weights once.
    bytes_accessed = itemsize * (b_pad * obs_dim + b_pad * act_dim) + weight_bytes

    mean_padded = pl.pallas_call(
        _policy_kernel,
        out_shape=jax.ShapeDtypeStruct((b_pad, act_dim), jnp.float32),
        grid_spec=pltpu.PrefetchScalarGridSpec(
            num_scalar_prefetch=0,
            grid=grid,
            in_specs=[
                pl.BlockSpec((tb, obs_dim), lambda i: (i, 0)),      # x: batch-tiled
                pl.BlockSpec((obs_dim, hidden), lambda i: (0, 0)),  # w1: resident
                pl.BlockSpec((1, hidden), lambda i: (0, 0)),        # b1: resident
                pl.BlockSpec((hidden, act_dim), lambda i: (0, 0)),  # w2: resident
                pl.BlockSpec((1, act_dim), lambda i: (0, 0)),       # b2: resident
            ],
            out_specs=pl.BlockSpec((tb, act_dim), lambda i: (i, 0)),
        ),
        compiler_params=pltpu.CompilerParams(
            dimension_semantics=("parallel",),
            vmem_limit_bytes=vmem_limit,
        ),
        cost_estimate=pl.CostEstimate(
            flops=flops, transcendentals=0, bytes_accessed=bytes_accessed),
    )(x, w1, b1.reshape(1, hidden), w2, b2.reshape(1, act_dim))

    mean = mean_padded[:B, :]
    # std is independent of x and only act_dim elements: compute in plain JAX.
    std = jnp.exp(log_std)
    return mean, std


def init_params(key, obs_dim, act_dim, hidden_size):
    """Deterministic init mirroring nn.Linear default (uniform(-1/sqrt(in), 1/sqrt(in)))."""
    k1, k2, k3, k4 = jax.random.split(key, 4)
    bound1 = 1.0 / jnp.sqrt(obs_dim)
    bound2 = 1.0 / jnp.sqrt(hidden_size)
    return {
        # stored as (in, out) so the kernel computes x @ W
        "w1": jax.random.uniform(k1, (obs_dim, hidden_size), jnp.float32,
                                 -bound1, bound1),
        "b1": jax.random.uniform(k2, (hidden_size,), jnp.float32, -bound1, bound1),
        "w2": jax.random.uniform(k3, (hidden_size, act_dim), jnp.float32,
                                 -bound2, bound2),
        "b2": jax.random.uniform(k4, (act_dim,), jnp.float32, -bound2, bound2),
        "log_std": jnp.zeros((act_dim,), jnp.float32),
    }


def _reference(x, params):
    h = jnp.maximum(x @ params["w1"] + params["b1"], 0.0)
    mean = h @ params["w2"] + params["b2"]
    std = jnp.exp(params["log_std"])
    return mean, std


if __name__ == "__main__":
    obs_dim, act_dim, hidden_size = 16, 8, 32
    key = jax.random.PRNGKey(0)
    kx, kx2, kp = jax.random.split(key, 3)
    params = init_params(kp, obs_dim, act_dim, hidden_size)

    # Small shape consistent with the module (tiny B exercises sublane padding).
    B = 2
    x = jax.random.normal(kx, (B, obs_dim), dtype=jnp.float32)
    mean, std = continuous_policy_forward(x, params)
    jax.block_until_ready((mean, std))

    mean_ref, std_ref = _reference(x, params)
    assert mean.shape == (B, act_dim) and std.shape == (act_dim,)
    assert jnp.allclose(mean, mean_ref, atol=1e-5), "mean mismatch (B=2)"
    assert jnp.allclose(std, std_ref, atol=1e-6), "std mismatch"

    # Larger batch exercises the multi-step grid (>=2 steps -> both v7x TCs)
    # and the ragged-batch padding path.
    B2 = 1000
    x2 = jax.random.normal(kx2, (B2, obs_dim), dtype=jnp.float32)
    mean2, std2 = continuous_policy_forward(x2, params)
    jax.block_until_ready((mean2, std2))
    mean2_ref, _ = _reference(x2, params)
    assert mean2.shape == (B2, act_dim)
    assert jnp.allclose(mean2, mean2_ref, atol=1e-5), "mean mismatch (B=1000)"

    print("KERNEL_OK")
</pallas_src>

<mosaic_0001>
module attributes {stable_mosaic.version = 11 : i64} {
  func.func @_policy_kernel(%arg0: i32, %arg1: memref<8x16xf32, #tpu.memory_space<vmem>>, %arg2: memref<16x32xf32, #tpu.memory_space<vmem>>, %arg3: memref<1x32xf32, #tpu.memory_space<vmem>>, %arg4: memref<32x8xf32, #tpu.memory_space<vmem>>, %arg5: memref<1x8xf32, #tpu.memory_space<vmem>>, %arg6: memref<8x8xf32, #tpu.memory_space<vmem>>) attributes {dimension_semantics = [#tpu.dimension_semantics<parallel>], iteration_bounds = array<i64: 1>, scalar_prefetch = 0 : i64, scratch_operands = 0 : i64, tpu.core_type = #tpu.core_type<tc>, window_params = [{transform_indices = @transform_0, window_bounds = array<i64: 8, 16>}, {pipeline_mode = #tpu.pipeline_mode<synchronous>, transform_indices = @transform_1, window_bounds = array<i64: 16, 32>}, {pipeline_mode = #tpu.pipeline_mode<synchronous>, transform_indices = @transform_2, window_bounds = array<i64: 1, 32>}, {pipeline_mode = #tpu.pipeline_mode<synchronous>, transform_indices = @transform_3, window_bounds = array<i64: 32, 8>}, {pipeline_mode = #tpu.pipeline_mode<synchronous>, transform_indices = @transform_4, window_bounds = array<i64: 1, 8>}, {transform_indices = @transform_5, window_bounds = array<i64: 8, 8>}]} {
    %c0 = arith.constant 0 : index
    %c0_0 = arith.constant 0 : index
    %0 = vector.load %arg1[%c0, %c0_0] : memref<8x16xf32, #tpu.memory_space<vmem>>, vector<8x16xf32>
    %c0_1 = arith.constant 0 : index
    %c0_2 = arith.constant 0 : index
    %1 = vector.load %arg2[%c0_1, %c0_2] : memref<16x32xf32, #tpu.memory_space<vmem>>, vector<16x32xf32>
    %cst = arith.constant dense<0.000000e+00> : vector<8x32xf32>
    %2 = tpu.matmul %0, %1, %cst {dimension_numbers = #tpu.dot_dimension_numbers<[1], [0], [0], [1], [0, 0, 1, 1], [], []>} : vector<8x16xf32>, vector<16x32xf32>, vector<8x32xf32> -> vector<8x32xf32>
    %c0_3 = arith.constant 0 : index
    %c0_4 = arith.constant 0 : index
    %3 = vector.load %arg3[%c0_3, %c0_4] : memref<1x32xf32, #tpu.memory_space<vmem>>, vector<1x32xf32>
    %4 = vector.broadcast %3 : vector<1x32xf32> to vector<8x32xf32>
    %5 = arith.addf %2, %4 : vector<8x32xf32>
    %cst_5 = arith.constant 0.000000e+00 : f32
    %6 = vector.broadcast %cst_5 : f32 to vector<8x32xf32>
    %7 = arith.maximumf %5, %6 : vector<8x32xf32>
    %c0_6 = arith.constant 0 : index
    %c0_7 = arith.constant 0 : index
    %8 = vector.load %arg4[%c0_6, %c0_7] : memref<32x8xf32, #tpu.memory_space<vmem>>, vector<32x8xf32>
    %cst_8 = arith.constant dense<0.000000e+00> : vector<8x8xf32>
    %9 = tpu.matmul %7, %8, %cst_8 {dimension_numbers = #tpu.dot_dimension_numbers<[1], [0], [0], [1], [0, 0, 1, 1], [], []>} : vector<8x32xf32>, vector<32x8xf32>, vector<8x8xf32> -> vector<8x8xf32>
    %c0_9 = arith.constant 0 : index
    %c0_10 = arith.constant 0 : index
    %10 = vector.load %arg5[%c0_9, %c0_10] : memref<1x8xf32, #tpu.memory_space<vmem>>, vector<1x8xf32>
    %11 = vector.broadcast %10 : vector<1x8xf32> to vector<8x8xf32>
    %12 = arith.addf %9, %11 : vector<8x8xf32>
    %c0_11 = arith.constant 0 : index
    %c0_12 = arith.constant 0 : index
    %13 = vector.load %arg6[%c0_11, %c0_12] : memref<8x8xf32, #tpu.memory_space<vmem>>, vector<8x8xf32>
    tpu.vector_store %arg6[%c0_11, %c0_12], %12 {strides = array<i32>} : memref<8x8xf32, #tpu.memory_space<vmem>>, vector<8x8xf32>,
    return
  }
  func.func @transform_0(%arg0: i32) -> (i32, i32) {
    %c0_i32 = arith.constant 0 : i32
    %c0_i32_0 = arith.constant 0 : i32
    return %arg0, %c0_i32 : i32, i32
  }
  func.func @transform_1(%arg0: i32) -> (i32, i32) {
    %c0_i32 = arith.constant 0 : i32
    %c0_i32_0 = arith.constant 0 : i32
    %c0_i32_1 = arith.constant 0 : i32
    return %c0_i32, %c0_i32_0 : i32, i32
  }
  func.func @transform_2(%arg0: i32) -> (i32, i32) {
    %c0_i32 = arith.constant 0 : i32
    %c0_i32_0 = arith.constant 0 : i32
    %c0_i32_1 = arith.constant 0 : i32
    return %c0_i32, %c0_i32_0 : i32, i32
  }
  func.func @transform_3(%arg0: i32) -> (i32, i32) {
    %c0_i32 = arith.constant 0 : i32
    %c0_i32_0 = arith.constant 0 : i32
    %c0_i32_1 = arith.constant 0 : i32
    return %c0_i32, %c0_i32_0 : i32, i32
  }
  func.func @transform_4(%arg0: i32) -> (i32, i32) {
    %c0_i32 = arith.constant 0 : i32
    %c0_i32_0 = arith.constant 0 : i32
    %c0_i32_1 = arith.constant 0 : i32
    return %c0_i32, %c0_i32_0 : i32, i32
  }
  func.func @transform_5(%arg0: i32) -> (i32, i32) {
    %c0_i32 = arith.constant 0 : i32
    %c0_i32_0 = arith.constant 0 : i32
    return %arg0, %c0_i32 : i32, i32
  }
}

</mosaic_0001>

<bundles_post_ra>
// kernel: tpu_custom_call.1
= control target key start
LH: loop header
LB: loop body
LE: loop exit
PB: predicated region body
PF: predicated region fallthrough
CT: control target
= control target key end

     0   :  { %vm28_vm0 = vcmask 130048   ;;  %s195_s0 = inlined_call_operand.vmem [shape: f32[8,16], index: 0, kind: input, shape index: {}]   ;;  %s196_s1 = inlined_call_operand.vmem [shape: f32[16,32], index: 1, kind: input, shape index: {}]   ;;  %s197_s2 = inlined_call_operand.vmem [shape: f32[1,32], index: 2, kind: input, shape index: {}]   ;;  %s198_s3 = inlined_call_operand.vmem [shape: f32[32,8], index: 3, kind: input, shape index: {}]   ;;  %s199_s4 = inlined_call_operand.vmem [shape: f32[1,8], index: 4, kind: input, shape index: {}]   ;;  %s200_s5 = inlined_call_operand.hbm [shape: f32[8,8], index: 5, kind: output, shape index: {}]  }
   0x1   :  { %v23_v0 = vld [vmem:[%s196_s1 + $0x8] sm:$0xff]  ;;  %v22_v1 = vld [vmem:[%s196_s1] sm:$0xff]  ;;  %v56_v3 = vld [vmem:[%s198_s3 + $0x18] sm:$0xff] }
   0x2   :  { %46 = vmatpush.msra.mxu0 %v23_v0  ;;  %v21_v2 = vld [vmem:[%s195_s0] sm:$0xff]  ;;  %77 = vmatpush.msra.mxu1 %v56_v3 }
   0x3   :  { %10 = vsyncpa [#allocation3], 0  ;;  %v55_v4 = vld [vmem:[%s198_s3 + $0x10] sm:$0xff]  ;;  %v54_v5 = vld [vmem:[%s198_s3 + $0x8] sm:$0xff]  ;;  %vm61_vm1 = vcmask 261120   ;;  %s134_s9 = smov [#allocation2]  }
   0x4   :  { %47 = vmatpush.msra.mxu0 %v22_v1  ;;  %78 = vmatpush.msra.mxu1 %v55_v4  ;;  %v53_v6 = vld [vmem:[%s198_s3] sm:$0xff]  ;;  %s92_s10 = sshll.u32 %s134_s9, 4  ;;  %s94_s3 = sshll.u32 %s200_s5, 4  ;;  %vm85_vm2 = vcmask 64512   ;;  %s93_s10 = int_to_ptr.vmem [resolvable:$true] %s92_s10  ;;  %s95_s3 = int_to_ptr.hbm [resolvable:$true] %s94_s3 }
   0x5   :  { %103 = vmatmul.msk.f32.vlgmr.msra.gmra.mxu0 %vm28_vm0, %v21_v2  ;;  %v106_v7 = vld [vmem:[%s197_s2] ss:$0 sm:$0xff] }
   0x6   :  { %79 = vmatpush.msra.mxu1 %v54_v5  ;;  %v107_v11 = vld [vmem:[%s199_s4] ss:$0 sm:$0xff] }
   0x8   :  { %80 = vmatpush.msra.mxu1 %v53_v6 }
  0x82   :  { %v49_v8 = vpop.f32.mrf.mxu0 }
  0x83   :  { %v50_v9 = vadd.f32 %v106_v7, %v49_v8 }
  0x85   :  { %v52_v10 = vmax.f32 %v50_v9, 0.0 }
  0x87   :  { %104 = vmatmul.msk.f32.vlgmr.msra.gmra.mxu1 %vm61_vm1, %v52_v10 }
 0x104   :  { %v82_v12 = vpop.f32.mrf.mxu1 }
 0x105   :  { %v83_v13 = vadd.f32 %v107_v11, %v82_v12 }
 0x107   :  { %86 = vst.msk [vmem:[#allocation2] sm:$0xff] %vm85_vm2, %v83_v13 }
 0x108   :  { %97 = dma.vmem_to_hbm [thread:$0]  %s93_s10, 128, %s95_s3, [#allocation3]  }
 0x109   :  { %132 = dma.done.wait [#allocation3], 128  }
 0x10a   :  { %133 = vsyncadd [#allocation3], 4294967168 }
 0x10b   :  { %102 = vsyncpa [#allocation3], 1 }

</bundles_post_ra>
